<compile_context>
chip_gen: v7x
topology: tpu7x:2x2x1
jax: 0.10.0
libtpu: 0.0.40
codegen_flags: <defaults>
</compile_context>

<pallas_src>
import jax
import jax.numpy as jnp
from jax.experimental import pallas as pl
from jax.experimental.pallas import tpu as pltpu

_LANES = 512            # lane-dense last dim (multiple of 128)
_SUBLANES = 8           # sublane granularity for f32
_MAX_BLOCK_ROWS = 512   # 512 x 512 f32 tile = 1 MiB per buffer
_MIN_PALLAS_ELEMENTS = 32768  # below this, XLA-fused sigmoid beats a kernel launch


def _sigmoid_kernel(x_ref, o_ref):
    # lax.logistic -> single EUP transcendental (free slot vs VALU divide).
    o_ref[...] = jax.nn.sigmoid(x_ref[...])


def _round_up(n, m):
    return ((n + m - 1) // m) * m


def _sigmoid_pallas(flat):
    """Elementwise sigmoid over a flat f32 vector via a tiled Pallas kernel."""
    n = flat.shape[0]
    rows = _round_up(pl.cdiv(n, _LANES), _SUBLANES)
    block_rows = min(_MAX_BLOCK_ROWS, rows)
    rows_total = _round_up(rows, block_rows)
    padded = rows_total * _LANES
    if padded != n:
        flat = jnp.pad(flat, (0, padded - n))
    x2d = flat.reshape(rows_total, _LANES)

    out = pl.pallas_call(
        _sigmoid_kernel,
        out_shape=jax.ShapeDtypeStruct((rows_total, _LANES), x2d.dtype),
        grid=(rows_total // block_rows,),
        in_specs=[pl.BlockSpec((block_rows, _LANES), lambda i: (i, 0))],
        out_specs=pl.BlockSpec((block_rows, _LANES), lambda i: (i, 0)),
        compiler_params=pltpu.CompilerParams(
            dimension_semantics=("parallel",)),
        # Pure streaming elementwise op: reuse the padded input buffer.
        input_output_aliases={0: 0},
    )(x2d)
    return out.reshape(-1)[:n]


def binary_classification_decision_layer(x, *, min_pallas_elements=_MIN_PALLAS_ELEMENTS):
    """Forward pass of BinaryClassificationDecisionLayer:
        logit = Identity(x).squeeze(); return sigmoid(logit)
    """
    # Identity + torch-style squeeze (removes ALL size-1 dims, incl. B=1 -> scalar).
    logit = jnp.squeeze(x)
    out_shape = logit.shape
    flat = logit.reshape(-1)

    if flat.size < min_pallas_elements:
        # Tiny batch: per-pallas_call overhead + HBM round trip dominate;
        # let XLA fuse the sigmoid into the producer instead.
        return jax.nn.sigmoid(logit)

    return _sigmoid_pallas(flat).reshape(out_shape)


if __name__ == "__main__":
    key = jax.random.PRNGKey(0)

    # batch=8 logits with input_dim=1, matching BinaryClassificationDecisionLayer.
    x_small = jax.random.normal(key, (8, 1), dtype=jnp.float32)
    ref_small = jax.nn.sigmoid(jnp.squeeze(x_small))

    # 1) Default path (tiny batch -> fused-XLA fast path).
    p_small = jax.block_until_ready(binary_classification_decision_layer(x_small))
    assert p_small.shape == ref_small.shape, (p_small.shape, ref_small.shape)
    assert jnp.allclose(p_small, ref_small, atol=1e-6, rtol=1e-6)

    # 2) Force the Pallas kernel on the same tiny batch (exercises padding + tiling).
    p_forced = jax.block_until_ready(
        binary_classification_decision_layer(x_small, min_pallas_elements=0))
    assert p_forced.shape == ref_small.shape, (p_forced.shape, ref_small.shape)
    assert jnp.allclose(p_forced, ref_small, atol=1e-6, rtol=1e-6)

    # 3) Non-tile-multiple batch through the Pallas path.
    x_med = jax.random.normal(jax.random.PRNGKey(0), (2000, 1), dtype=jnp.float32)
    ref_med = jax.nn.sigmoid(jnp.squeeze(x_med))
    p_med = jax.block_until_ready(
        binary_classification_decision_layer(x_med, min_pallas_elements=0))
    assert p_med.shape == ref_med.shape, (p_med.shape, ref_med.shape)
    assert jnp.allclose(p_med, ref_med, atol=1e-6, rtol=1e-6)

    print("KERNEL_OK")
</pallas_src>

<mosaic_0001>
module attributes {stable_mosaic.version = 11 : i64} {
  func.func @_sigmoid_kernel(%arg0: i32, %arg1: memref<8x512xf32, #tpu.memory_space<vmem>>, %arg2: memref<8x512xf32, #tpu.memory_space<vmem>>) attributes {dimension_semantics = [#tpu.dimension_semantics<parallel>], iteration_bounds = array<i64: 1>, scalar_prefetch = 0 : i64, scratch_operands = 0 : i64, tpu.core_type = #tpu.core_type<tc>, window_params = [{transform_indices = @transform_0, window_bounds = array<i64: 8, 512>}, {transform_indices = @transform_1, window_bounds = array<i64: 8, 512>}]} {
    %c0 = arith.constant 0 : index
    %c0_0 = arith.constant 0 : index
    %0 = vector.load %arg1[%c0, %c0_0] : memref<8x512xf32, #tpu.memory_space<vmem>>, vector<8x512xf32>
    %1 = arith.negf %0 : vector<8x512xf32>
    %2 = math.exp %1 : vector<8x512xf32>
    %cst = arith.constant 1.000000e+00 : f32
    %3 = vector.broadcast %cst : f32 to vector<8x512xf32>
    %4 = arith.addf %3, %2 : vector<8x512xf32>
    %5 = arith.divf %3, %4 : vector<8x512xf32>
    %c0_1 = arith.constant 0 : index
    %c0_2 = arith.constant 0 : index
    %6 = vector.load %arg2[%c0_1, %c0_2] : memref<8x512xf32, #tpu.memory_space<vmem>>, vector<8x512xf32>
    tpu.vector_store %arg2[%c0_1, %c0_2], %5 {strides = array<i32>} : memref<8x512xf32, #tpu.memory_space<vmem>>, vector<8x512xf32>,
    return
  }
  func.func @transform_0(%arg0: i32) -> (i32, i32) {
    %c0_i32 = arith.constant 0 : i32
    %c0_i32_0 = arith.constant 0 : i32
    return %arg0, %c0_i32 : i32, i32
  }
  func.func @transform_1(%arg0: i32) -> (i32, i32) {
    %c0_i32 = arith.constant 0 : i32
    %c0_i32_0 = arith.constant 0 : i32
    return %arg0, %c0_i32 : i32, i32
  }
}

</mosaic_0001>

<bundles_post_ra>
// kernel: tpu_custom_call.1
= control target key start
LH: loop header
LB: loop body
LE: loop exit
PB: predicated region body
PF: predicated region fallthrough
CT: control target
= control target key end

     0   :  { %6 = vsyncpa [#allocation3], 0  ;;  %s174_s0 = inlined_call_operand.hbm [shape: f32[8,512], index: 0, kind: input, shape index: {}, may-alias: {0,1}]   ;;  %s175_s1 = inlined_call_operand.hbm [shape: f32[8,512], index: 1, kind: output, shape index: {}, may-alias: {0,1}]  }
   0x1   :  { %7 = vsyncpa [#allocation4], 0  ;;  %s138_s6 = smov [#allocation2]   ;;  %s90_s10 = scalar_lea.hbm %s174_s0, 512 }
   0x2   :  { %s14_s7 = sshll.u32 %s138_s6, 4  ;;  %p91_p0 = scmp.ne.s32.totalorder %s174_s0, %s90_s10  ;;  %s15_s7 = int_to_ptr.vmem [resolvable:$true] %s14_s7 }
   0x3   :  { %p94_p1 = scmp.lt.u32.totalorder %s90_s10, %s174_s0 }
   0x5   :  { %p96_p2 = pnand %p94_p1, %p91_p0 }
   0x7   :  { %99 = shalt.err (!%p96_p2)
}
   0x8   :  { %s100_s15 = scalar_lea.vmem %s15_s7, 512  ;;  %p105_p4 = scmp.lt.s32.totalorder %s15_s7, %s15_s7 }
   0x9   :  { %p101_p3 = scmp.ne.s32.totalorder %s15_s7, %s100_s15  ;;  %p106_p5 = scmp.lt.s32.totalorder %s100_s15, %s100_s15 }
   0xb   :  { %p107_p6 = por %p106_p5, %p105_p4 }
   0xd   :  { %p108_p7 = pnand %p107_p6, %p101_p3 }
   0xf   :  { %111 = shalt.err (!%p108_p7)
}
  0x10   :  { %17 = dma.hbm_to_vmem [thread:$0]  %s174_s0, 512, %s15_s7, [#allocation3]  }
  0x11   :  { %134 = dma.done.wait [#allocation3], 512  }
  0x12   :  { %135 = vsyncadd [#allocation3], 4294966784  ;;  %v21_v0 = vld [vmem:[#allocation2] sm:$0xff]  ;;  %v22_v1 = vld [vmem:[#allocation2 + $0x8] sm:$0xff]  ;;  %s139_s0 = smov [#allocation5]  }
  0x13   :  { %v23_v2 = vld [vmem:[#allocation2 + $0x10] sm:$0xff]  ;;  %v68_v3 = vmul.f32 -1.442695, %v21_v0  ;;  %v69_v4 = vmul.f32 -1.442695, %v22_v1  ;;  %v24_v6 = vld [vmem:[#allocation2 + $0x18] sm:$0xff] }
  0x14   :  { %v70_v5 = vmul.f32 -1.442695, %v23_v2  ;;  %v71_v7 = vmul.f32 -1.442695, %v24_v6  ;;  %s59_s18 = sshll.u32 %s139_s0, 4  ;;  %s60_s18 = int_to_ptr.vmem [resolvable:$true] %s59_s18 }
  0x15   :  { %74 = vpow2.f32 %v68_v3  ;;  %s112_s19 = scalar_lea.vmem %s60_s18, 512  ;;  %p117_p9 = scmp.lt.s32.totalorder %s60_s18, %s60_s18 }
  0x16   :  { %76 = vpow2.f32 %v69_v4  ;;  %p113_p8 = scmp.ne.s32.totalorder %s60_s18, %s112_s19  ;;  %p118_p10 = scmp.lt.s32.totalorder %s112_s19, %s112_s19 }
  0x17   :  { %78 = vpow2.f32 %v70_v5 }
  0x18   :  { %80 = vpow2.f32 %v71_v7  ;;  %p119_p11 = por %p118_p10, %p117_p9 }
  0x1a   :  { %p120_p12 = pnand %p119_p11, %p113_p8 }
  0x1f   :  { %v75_v8 = vpop.eup %74 }
  0x20   :  { %v77_v9 = vpop.eup %76  ;;  %v37_v10 = vadd.f32 1.0, %v75_v8 }
  0x21   :  { %v79_v11 = vpop.eup %78  ;;  %v38_v12 = vadd.f32 1.0, %v77_v9 }
  0x22   :  { %v81_v13 = vpop.eup %80  ;;  %82 = vrcp.f32 %v37_v10  ;;  %v39_v14 = vadd.f32 1.0, %v79_v11 }
  0x23   :  { %84 = vrcp.f32 %v38_v12  ;;  %v40_v15 = vadd.f32 1.0, %v81_v13 }
  0x24   :  { %86 = vrcp.f32 %v39_v14 }
  0x25   :  { %88 = vrcp.f32 %v40_v15 }
  0x2c   :  { %v83_v16 = vpop.eup %82 }
  0x2d   :  { %v85_v17 = vpop.eup %84  ;;  %49 = vst [vmem:[#allocation5] sm:$0xff] %v83_v16 }
  0x2e   :  { %v87_v18 = vpop.eup %86  ;;  %50 = vst [vmem:[#allocation5 + $0x8] sm:$0xff] %v85_v17 }
  0x2f   :  { %v89_v19 = vpop.eup %88  ;;  %51 = vst [vmem:[#allocation5 + $0x10] sm:$0xff] %v87_v18 }
  0x30   :  { %52 = vst [vmem:[#allocation5 + $0x18] sm:$0xff] %v89_v19 }
  0x31   :  { %123 = shalt.err (!%p120_p12)
}
  0x32   :  { %s124_s22 = scalar_lea.hbm %s175_s1, 512 }
  0x33   :  { %p125_p13 = scmp.ne.s32.totalorder %s175_s1, %s124_s22  ;;  %p128_p0 = scmp.lt.u32.totalorder %s124_s22, %s175_s1 }
  0x35   :  { %p130_p1 = pnand %p128_p0, %p125_p13 }
  0x37   :  { %133 = shalt.err (!%p130_p1)
}
  0x38   :  { %62 = dma.vmem_to_hbm [thread:$0]  %s60_s18, 512, %s175_s1, [#allocation4]  }
  0x39   :  { %136 = dma.done.wait [#allocation4], 512  }
  0x3a   :  { %137 = vsyncadd [#allocation4], 4294966784 }
  0x3b   :  { %66 = vsyncpa [#allocation3], 1 }
  0x3c   :  { %67 = vsyncpa [#allocation4], 1 }

</bundles_post_ra>
